<compile_context>
chip_gen: v7x
topology: tpu7x:2x2x1
jax: 0.10.0
libtpu: 0.0.40
codegen_flags: <defaults>
</compile_context>

<pallas_src>
import functools

import jax
import jax.numpy as jnp
from jax.experimental import pallas as pl
from jax.experimental.pallas import tpu as pltpu

LANE = 128
SUBLANE = 8


def _round_up(x, m):
    return ((x + m - 1) // m) * m


# ---------------- Fused Pallas kernel ----------------

def _make_fused_kernel(num_hidden, out_valid):
    """Kernel refs: x, (w0, b0), ..., (w_{H-1}, b_{H-1}), (w_out, b_out), out."""

    def kernel(*refs):
        x_ref = refs[0]
        o_ref = refs[-1]
        wb = refs[1:-1]

        h = x_ref[...]  # f32 activation tile, stays in VMEM/vregs the whole time
        for li in range(num_hidden):
            w_ref = wb[2 * li]
            b_ref = wb[2 * li + 1]
            y = jnp.dot(h.astype(w_ref.dtype), w_ref[...],
                        preferred_element_type=jnp.float32)
            y = y + b_ref[...]            # f32 epilogue (v5e has no bf16 VPU)
            h = jnp.maximum(y, 0.0)
            # Dropout is identity in eval mode (see TODO at top of file).

        w_ref = wb[-2]
        b_ref = wb[-1]
        y = jnp.dot(h.astype(w_ref.dtype), w_ref[...],
                    preferred_element_type=jnp.float32)
        y = y + b_ref[...]

        # Mask lane-padded logit columns so they don't pollute log_softmax.
        if y.shape[-1] > out_valid:
            col = jax.lax.broadcasted_iota(jnp.int32, y.shape, 1)
            y = jnp.where(col < out_valid, y, -jnp.inf)

        m = jnp.max(y, axis=-1, keepdims=True)
        shifted = y - m
        lse = jnp.log(jnp.sum(jnp.exp(shifted), axis=-1, keepdims=True))
        o_ref[...] = (shifted - lse).astype(o_ref.dtype)

    return kernel


# ---------------- Wrapper ----------------

@functools.partial(jax.jit, static_argnames=("matmul_dtype", "tm_target"))
def classifier_forward(params, x, *, matmul_dtype=jnp.float32, tm_target=256):
    B, in_dim = x.shape
    hidden = params["hidden"]
    w_out, b_out = params["out"]
    out_dim = w_out.shape[1]

    # Lane-pad every feature dim to a multiple of 128.
    dims = [in_dim] + [w.shape[1] for (w, _) in hidden] + [out_dim]
    dims_pad = [_round_up(d, LANE) for d in dims]
    out_pad = dims_pad[-1]

    # Batch tile: big tiles for real batches, clamp for toy batches.
    tm = min(tm_target, _round_up(B, SUBLANE))
    b_pad = _round_up(B, tm)

    # Zero-pad activations: padded features stay exactly 0 through every layer
    # (zero weight rows/cols, zero bias, relu(0)=0), so results are unchanged.
    x_p = jnp.zeros((b_pad, dims_pad[0]), jnp.float32).at[:B, :in_dim].set(x)

    def pad_wb(w, b, din_p, dout_p):
        wp = jnp.zeros((din_p, dout_p), jnp.float32)
        wp = wp.at[: w.shape[0], : w.shape[1]].set(w)
        bp = jnp.zeros((1, dout_p), jnp.float32).at[:, : b.shape[1]].set(b)
        return wp.astype(matmul_dtype), bp  # bias stays f32 (epilogue dtype)

    flat_inputs = [x_p]
    in_specs = [pl.BlockSpec((tm, dims_pad[0]), lambda i: (i, 0))]
    all_wb = list(hidden) + [(w_out, b_out)]
    for li, (w, b) in enumerate(all_wb):
        wp, bp = pad_wb(w, b, dims_pad[li], dims_pad[li + 1])
        flat_inputs += [wp, bp]
        in_specs += [
            pl.BlockSpec((dims_pad[li], dims_pad[li + 1]), lambda i: (0, 0)),
            pl.BlockSpec((1, dims_pad[li + 1]), lambda i: (0, 0)),
        ]

    kernel = _make_fused_kernel(len(hidden), out_dim)

    # Scheduler hint.
    flops = 2 * b_pad * sum(dims_pad[i] * dims_pad[i + 1]
                            for i in range(len(dims_pad) - 1))
    transcendentals = b_pad * out_pad  # exp in softmax (log is negligible)
    bytes_accessed = (sum(int(a.size) * a.dtype.itemsize for a in flat_inputs)
                      + b_pad * out_pad * 4)

    # VMEM budget: double-buffered x/out tiles + resident weights, with headroom,
    # kept well under v7x's 64 MiB physical VMEM.
    weight_bytes = sum(int(a.size) * a.dtype.itemsize for a in flat_inputs[1:])
    tile_bytes = tm * (dims_pad[0] + out_pad) * 4
    vmem_limit = int(min(max(2 * (weight_bytes + tile_bytes) + (4 << 20),
                             16 << 20), 48 << 20))

    out = pl.pallas_call(
        kernel,
        out_shape=jax.ShapeDtypeStruct((b_pad, out_pad), jnp.float32),
        grid_spec=pltpu.PrefetchScalarGridSpec(
            num_scalar_prefetch=0,
            grid=(b_pad // tm,),
            in_specs=in_specs,
            out_specs=pl.BlockSpec((tm, out_pad), lambda i: (i, 0)),
        ),
        compiler_params=pltpu.CompilerParams(
            dimension_semantics=("parallel",),
            vmem_limit_bytes=vmem_limit,
        ),
        cost_estimate=pl.CostEstimate(
            flops=flops,
            transcendentals=transcendentals,
            bytes_accessed=bytes_accessed,
        ),
    )(*flat_inputs)

    return out[:B, :out_dim]


# ---------------- Params (mimics nn.Linear init; weights stored [in, out]) ----------------

def init_classifier_params(key, input_size, output_size, hidden_size):
    dims = [input_size] + list(hidden_size)
    params = {"hidden": [], "out": None}
    for h_in, h_out in zip(dims[:-1], dims[1:]):
        key, kw, kb = jax.random.split(key, 3)
        bound = 1.0 / jnp.sqrt(h_in)
        w = jax.random.uniform(kw, (h_in, h_out), jnp.float32, -bound, bound)
        b = jax.random.uniform(kb, (1, h_out), jnp.float32, -bound, bound)
        params["hidden"].append((w, b))
    key, kw, kb = jax.random.split(key, 3)
    bound = 1.0 / jnp.sqrt(hidden_size[-1])
    w = jax.random.uniform(kw, (hidden_size[-1], output_size), jnp.float32, -bound, bound)
    b = jax.random.uniform(kb, (1, output_size), jnp.float32, -bound, bound)
    params["out"] = (w, b)
    return params


# ---------------- Plain-JAX reference ----------------

def classifier_ref(params, x):
    for w, b in params["hidden"]:
        x = jnp.maximum(x @ w + b, 0.0)
    w, b = params["out"]
    y = x @ w + b
    return jax.nn.log_softmax(y, axis=1)


if __name__ == "__main__":
    key = jax.random.PRNGKey(0)

    batch = 8
    input_size = 32
    hidden_size = [64, 48]
    output_size = 16

    kx, kp = jax.random.split(key)
    x = jax.random.normal(kx, (batch, input_size), jnp.float32)
    params = init_classifier_params(kp, input_size, output_size, hidden_size)

    ref = classifier_ref(params, x)

    # f32 matmul path (exact vs reference)
    out_f32 = jax.block_until_ready(classifier_forward(params, x))
    assert out_f32.shape == (batch, output_size)
    assert jnp.allclose(out_f32, ref, atol=1e-5, rtol=1e-5), "f32 mismatch vs reference"

    # bf16-input matmul path (v6e/v7x MXU); accumulation stays f32.
    out_bf16 = jax.block_until_ready(
        classifier_forward(params, x, matmul_dtype=jnp.bfloat16))
    assert out_bf16.shape == (batch, output_size)
    assert jnp.allclose(out_bf16, ref, atol=5e-2, rtol=5e-2), "bf16 mismatch vs reference"

    print("KERNEL_OK")
</pallas_src>

<mosaic_0001>
module attributes {stable_mosaic.version = 11 : i64} {
  func.func @kernel(%arg0: i32, %arg1: memref<8x128xf32, #tpu.memory_space<vmem>>, %arg2: memref<128x128xf32, #tpu.memory_space<vmem>>, %arg3: memref<1x128xf32, #tpu.memory_space<vmem>>, %arg4: memref<128x128xf32, #tpu.memory_space<vmem>>, %arg5: memref<1x128xf32, #tpu.memory_space<vmem>>, %arg6: memref<128x128xf32, #tpu.memory_space<vmem>>, %arg7: memref<1x128xf32, #tpu.memory_space<vmem>>, %arg8: memref<8x128xf32, #tpu.memory_space<vmem>>) attributes {dimension_semantics = [#tpu.dimension_semantics<parallel>], iteration_bounds = array<i64: 1>, scalar_prefetch = 0 : i64, scratch_operands = 0 : i64, tpu.core_type = #tpu.core_type<tc>, window_params = [{transform_indices = @transform_0, window_bounds = array<i64: 8, 128>}, {pipeline_mode = #tpu.pipeline_mode<synchronous>, transform_indices = @transform_1, window_bounds = array<i64: 128, 128>}, {pipeline_mode = #tpu.pipeline_mode<synchronous>, transform_indices = @transform_2, window_bounds = array<i64: 1, 128>}, {pipeline_mode = #tpu.pipeline_mode<synchronous>, transform_indices = @transform_3, window_bounds = array<i64: 128, 128>}, {pipeline_mode = #tpu.pipeline_mode<synchronous>, transform_indices = @transform_4, window_bounds = array<i64: 1, 128>}, {pipeline_mode = #tpu.pipeline_mode<synchronous>, transform_indices = @transform_5, window_bounds = array<i64: 128, 128>}, {pipeline_mode = #tpu.pipeline_mode<synchronous>, transform_indices = @transform_6, window_bounds = array<i64: 1, 128>}, {transform_indices = @transform_7, window_bounds = array<i64: 8, 128>}]} {
    %c0 = arith.constant 0 : index
    %c0_0 = arith.constant 0 : index
    %0 = vector.load %arg1[%c0, %c0_0] : memref<8x128xf32, #tpu.memory_space<vmem>>, vector<8x128xf32>
    %c0_1 = arith.constant 0 : index
    %c0_2 = arith.constant 0 : index
    %1 = vector.load %arg2[%c0_1, %c0_2] : memref<128x128xf32, #tpu.memory_space<vmem>>, vector<128x128xf32>
    %cst = arith.constant dense<0.000000e+00> : vector<8x128xf32>
    %2 = tpu.matmul %0, %1, %cst {dimension_numbers = #tpu.dot_dimension_numbers<[1], [0], [0], [1], [0, 0, 1, 1], [], []>} : vector<8x128xf32>, vector<128x128xf32>, vector<8x128xf32> -> vector<8x128xf32>
    %c0_3 = arith.constant 0 : index
    %c0_4 = arith.constant 0 : index
    %3 = vector.load %arg3[%c0_3, %c0_4] : memref<1x128xf32, #tpu.memory_space<vmem>>, vector<1x128xf32>
    %4 = vector.broadcast %3 : vector<1x128xf32> to vector<8x128xf32>
    %5 = arith.addf %2, %4 : vector<8x128xf32>
    %cst_5 = arith.constant 0.000000e+00 : f32
    %6 = vector.broadcast %cst_5 : f32 to vector<8x128xf32>
    %7 = arith.maximumf %5, %6 : vector<8x128xf32>
    %c0_6 = arith.constant 0 : index
    %c0_7 = arith.constant 0 : index
    %8 = vector.load %arg4[%c0_6, %c0_7] : memref<128x128xf32, #tpu.memory_space<vmem>>, vector<128x128xf32>
    %cst_8 = arith.constant dense<0.000000e+00> : vector<8x128xf32>
    %9 = tpu.matmul %7, %8, %cst_8 {dimension_numbers = #tpu.dot_dimension_numbers<[1], [0], [0], [1], [0, 0, 1, 1], [], []>} : vector<8x128xf32>, vector<128x128xf32>, vector<8x128xf32> -> vector<8x128xf32>
    %c0_9 = arith.constant 0 : index
    %c0_10 = arith.constant 0 : index
    %10 = vector.load %arg5[%c0_9, %c0_10] : memref<1x128xf32, #tpu.memory_space<vmem>>, vector<1x128xf32>
    %11 = vector.broadcast %10 : vector<1x128xf32> to vector<8x128xf32>
    %12 = arith.addf %9, %11 : vector<8x128xf32>
    %cst_11 = arith.constant 0.000000e+00 : f32
    %13 = vector.broadcast %cst_11 : f32 to vector<8x128xf32>
    %14 = arith.maximumf %12, %13 : vector<8x128xf32>
    %c0_12 = arith.constant 0 : index
    %c0_13 = arith.constant 0 : index
    %15 = vector.load %arg6[%c0_12, %c0_13] : memref<128x128xf32, #tpu.memory_space<vmem>>, vector<128x128xf32>
    %cst_14 = arith.constant dense<0.000000e+00> : vector<8x128xf32>
    %16 = tpu.matmul %14, %15, %cst_14 {dimension_numbers = #tpu.dot_dimension_numbers<[1], [0], [0], [1], [0, 0, 1, 1], [], []>} : vector<8x128xf32>, vector<128x128xf32>, vector<8x128xf32> -> vector<8x128xf32>
    %c0_15 = arith.constant 0 : index
    %c0_16 = arith.constant 0 : index
    %17 = vector.load %arg7[%c0_15, %c0_16] : memref<1x128xf32, #tpu.memory_space<vmem>>, vector<1x128xf32>
    %18 = vector.broadcast %17 : vector<1x128xf32> to vector<8x128xf32>
    %19 = arith.addf %16, %18 : vector<8x128xf32>
    %20 = tpu.iota {dimensions = array<i32: 1>} : vector<8x128xi32>
    %c16_i32 = arith.constant 16 : i32
    %21 = vector.broadcast %c16_i32 : i32 to vector<8x128xi32>
    %22 = arith.cmpi slt, %20, %21 : vector<8x128xi32>
    %cst_17 = arith.constant 0xFF800000 : f32
    %23 = vector.broadcast %cst_17 : f32 to vector<8x128xf32>
    %24 = arith.select %22, %19, %23 : vector<8x128xi1>, vector<8x128xf32>
    %cst_18 = arith.constant dense<0xFF800000> : vector<8xf32>
    %25 = vector.multi_reduction <maximumf>, %24, %cst_18 [1] : vector<8x128xf32> to vector<8xf32>
    %26 = vector.shape_cast %25 : vector<8xf32> to vector<8x1xf32>
    %27 = vector.broadcast %26 : vector<8x1xf32> to vector<8x128xf32>
    %28 = arith.subf %24, %27 : vector<8x128xf32>
    %29 = math.exp %28 : vector<8x128xf32>
    %cst_19 = arith.constant dense<0.000000e+00> : vector<8xf32>
    %30 = vector.multi_reduction <add>, %29, %cst_19 [1] : vector<8x128xf32> to vector<8xf32>
    %31 = vector.shape_cast %30 : vector<8xf32> to vector<8x1xf32>
    %32 = math.log %31 : vector<8x1xf32>
    %33 = vector.broadcast %32 : vector<8x1xf32> to vector<8x128xf32>
    %34 = arith.subf %28, %33 : vector<8x128xf32>
    %c0_20 = arith.constant 0 : index
    %c0_21 = arith.constant 0 : index
    %35 = vector.load %arg8[%c0_20, %c0_21] : memref<8x128xf32, #tpu.memory_space<vmem>>, vector<8x128xf32>
    tpu.vector_store %arg8[%c0_20, %c0_21], %34 {strides = array<i32>} : memref<8x128xf32, #tpu.memory_space<vmem>>, vector<8x128xf32>,
    return
  }
  func.func @transform_0(%arg0: i32) -> (i32, i32) {
    %c0_i32 = arith.constant 0 : i32
    %c0_i32_0 = arith.constant 0 : i32
    return %arg0, %c0_i32 : i32, i32
  }
  func.func @transform_1(%arg0: i32) -> (i32, i32) {
    %c0_i32 = arith.constant 0 : i32
    %c0_i32_0 = arith.constant 0 : i32
    %c0_i32_1 = arith.constant 0 : i32
    return %c0_i32, %c0_i32_0 : i32, i32
  }
  func.func @transform_2(%arg0: i32) -> (i32, i32) {
    %c0_i32 = arith.constant 0 : i32
    %c0_i32_0 = arith.constant 0 : i32
    %c0_i32_1 = arith.constant 0 : i32
    return %c0_i32, %c0_i32_0 : i32, i32
  }
  func.func @transform_3(%arg0: i32) -> (i32, i32) {
    %c0_i32 = arith.constant 0 : i32
    %c0_i32_0 = arith.constant 0 : i32
    %c0_i32_1 = arith.constant 0 : i32
    return %c0_i32, %c0_i32_0 : i32, i32
  }
  func.func @transform_4(%arg0: i32) -> (i32, i32) {
    %c0_i32 = arith.constant 0 : i32
    %c0_i32_0 = arith.constant 0 : i32
    %c0_i32_1 = arith.constant 0 : i32
    return %c0_i32, %c0_i32_0 : i32, i32
  }
  func.func @transform_5(%arg0: i32) -> (i32, i32) {
    %c0_i32 = arith.constant 0 : i32
    %c0_i32_0 = arith.constant 0 : i32
    %c0_i32_1 = arith.constant 0 : i32
    return %c0_i32, %c0_i32_0 : i32, i32
  }
  func.func @transform_6(%arg0: i32) -> (i32, i32) {
    %c0_i32 = arith.constant 0 : i32
    %c0_i32_0 = arith.constant 0 : i32
    %c0_i32_1 = arith.constant 0 : i32
    return %c0_i32, %c0_i32_0 : i32, i32
  }
  func.func @transform_7(%arg0: i32) -> (i32, i32) {
    %c0_i32 = arith.constant 0 : i32
    %c0_i32_0 = arith.constant 0 : i32
    return %arg0, %c0_i32 : i32, i32
  }
}

</mosaic_0001>

<bundles_post_ra>
// kernel: classifier_forward.1
= control target key start
LH: loop header
LB: loop body
LE: loop exit
PB: predicated region body
PF: predicated region fallthrough
CT: control target
= control target key end

     0   :  { %v601_v3 = vmov 0.0|0.0   ;;  %vm602_vm0 = vmmov 0   ;;  %v603_v6 = vmov 0.0   ;;  %s843_s0 = inlined_call_operand.vmem [shape: f32[8,128], index: 0, kind: input, shape index: {}]   ;;  %s844_s1 = inlined_call_operand.vmem [shape: f32[128,128], index: 1, kind: input, shape index: {}]   ;;  %s845_s2 = inlined_call_operand.vmem [shape: f32[1,128], index: 2, kind: input, shape index: {}]   ;;  %s846_s3 = inlined_call_operand.vmem [shape: f32[128,128], index: 3, kind: input, shape index: {}]   ;;  %s847_s4 = inlined_call_operand.vmem [shape: f32[1,128], index: 4, kind: input, shape index: {}]   ;;  %s848_s5 = inlined_call_operand.vmem [shape: f32[128,128], index: 5, kind: input, shape index: {}]   ;;  %s849_s6 = inlined_call_operand.vmem [shape: f32[1,128], index: 6, kind: input, shape index: {}]   ;;  %s850_s7 = inlined_call_operand.hbm [shape: f32[8,128], index: 7, kind: output, shape index: {}]  }
   0x1   :  { %v28_v0 = vld [vmem:[%s844_s1] sm:$0xff]  ;;  %v29_v1 = vld [vmem:[%s844_s1 + $0x8] sm:$0xff]  ;;  %v30_v2 = vld [vmem:[%s844_s1 + $0x10] sm:$0xff]  ;;  %497 = vmatprep.subr.bf16.mxu0 %v601_v3  ;;  %424 = vmatprep.mubr.msk.f32.mxu0 %vm602_vm0, %v603_v6 }
   0x2   :  { %v498_v4 = vpack.c.bf16 %v29_v1, %v28_v0  ;;  %v31_v5 = vld [vmem:[%s844_s1 + $0x18] sm:$0xff]  ;;  %521 = vmatprep.subr.bf16.mxu1 %v601_v3  ;;  %459 = vmatprep.mubr.msk.f32.mxu1 %vm602_vm0, %v603_v6  ;;  %v32_v8 = vld [vmem:[%s844_s1 + $0x20] sm:$0xff]  ;;  %v33_v9 = vld [vmem:[%s844_s1 + $0x28] sm:$0xff] }
   0x3   :  { %v501_v7 = vpack.c.bf16 %v31_v5, %v30_v2  ;;  %v122_v10 = vld [vmem:[%s846_s3] sm:$0xff]  ;;  %v123_v11 = vld [vmem:[%s846_s3 + $0x8] sm:$0xff]  ;;  %v124_v12 = vld [vmem:[%s846_s3 + $0x10] sm:$0xff]  ;;  %v504_v14 = vpack.c.bf16 %v33_v9, %v32_v8 }
   0x4   :  { %499 = vmatpush3.bf16.msra.mxu0 %v498_v4  ;;  %v125_v13 = vld [vmem:[%s846_s3 + $0x18] sm:$0xff]  ;;  %v522_v15 = vpack.c.bf16 %v123_v11, %v122_v10  ;;  %v34_v16 = vld [vmem:[%s844_s1 + $0x30] sm:$0xff]  ;;  %v126_v19 = vld [vmem:[%s846_s3 + $0x20] sm:$0xff] }
   0x5   :  { %500 = vmatprep.subr.bf16.mxu0 %v601_v3  ;;  %v35_v17 = vld [vmem:[%s844_s1 + $0x38] sm:$0xff]  ;;  %v525_v18 = vpack.c.bf16 %v125_v13, %v124_v12  ;;  %v127_v20 = vld [vmem:[%s846_s3 + $0x28] sm:$0xff] }
   0x6   :  { %523 = vmatpush3.bf16.msra.mxu1 %v522_v15 }
   0x7   :  { %524 = vmatprep.subr.bf16.mxu1 %v601_v3 }
   0x8   :  { %502 = vmatpush3.bf16.msra.mxu0 %v501_v7 }
   0x9   :  { %503 = vmatprep.subr.bf16.mxu0 %v601_v3 }
   0xa   :  { %12 = vsyncpa [#allocation3], 0  ;;  %v507_v21 = vpack.c.bf16 %v35_v17, %v34_v16  ;;  %v36_v22 = vld [vmem:[%s844_s1 + $0x40] sm:$0xff]  ;;  %v37_v23 = vld [vmem:[%s844_s1 + $0x48] sm:$0xff]  ;;  %526 = vmatpush3.bf16.msra.mxu1 %v525_v18  ;;  %v528_v24 = vpack.c.bf16 %v127_v20, %v126_v19 }
   0xb   :  { %527 = vmatprep.subr.bf16.mxu1 %v601_v3  ;;  %v128_v25 = vld [vmem:[%s846_s3 + $0x30] sm:$0xff]  ;;  %v129_v26 = vld [vmem:[%s846_s3 + $0x38] sm:$0xff]  ;;  %v510_v27 = vpack.c.bf16 %v37_v23, %v36_v22  ;;  %v130_v31 = vld [vmem:[%s846_s3 + $0x40] sm:$0xff] }
   0xc   :  { %505 = vmatpush3.bf16.msra.mxu0 %v504_v14  ;;  %v38_v28 = vld [vmem:[%s844_s1 + $0x50] sm:$0xff]  ;;  %v39_v29 = vld [vmem:[%s844_s1 + $0x58] sm:$0xff]  ;;  %v531_v30 = vpack.c.bf16 %v129_v26, %v128_v25  ;;  %v131_v32 = vld [vmem:[%s846_s3 + $0x48] sm:$0xff] }
   0xd   :  { %506 = vmatprep.subr.bf16.mxu0 %v601_v3  ;;  %v513_v33 = vpack.c.bf16 %v39_v29, %v38_v28  ;;  %v40_v34 = vld [vmem:[%s844_s1 + $0x60] sm:$0xff]  ;;  %v41_v35 = vld [vmem:[%s844_s1 + $0x68] sm:$0xff]  ;;  %v534_v36 = vpack.c.bf16 %v131_v32, %v130_v31  ;;  %v132_v37 = vld [vmem:[%s846_s3 + $0x50] sm:$0xff] }
   0xe   :  { %529 = vmatpush3.bf16.msra.mxu1 %v528_v24  ;;  %v133_v38 = vld [vmem:[%s846_s3 + $0x58] sm:$0xff]  ;;  %v516_v39 = vpack.c.bf16 %v41_v35, %v40_v34  ;;  %v42_v40 = vld [vmem:[%s844_s1 + $0x70] sm:$0xff]  ;;  %v134_v43 = vld [vmem:[%s846_s3 + $0x60] sm:$0xff] }
   0xf   :  { %530 = vmatprep.subr.bf16.mxu1 %v601_v3  ;;  %v43_v41 = vld [vmem:[%s844_s1 + $0x78] sm:$0xff]  ;;  %v537_v42 = vpack.c.bf16 %v133_v38, %v132_v37  ;;  %v135_v44 = vld [vmem:[%s846_s3 + $0x68] sm:$0xff]  ;;  %v27_v47 = vld [vmem:[%s843_s0] sm:$0xff] }
  0x10   :  { %508 = vmatpush3.bf16.msra.mxu0 %v507_v21  ;;  %v519_v45 = vpack.c.bf16 %v43_v41, %v42_v40  ;;  %v540_v46 = vpack.c.bf16 %v135_v44, %v134_v43  ;;  %v136_v48 = vld [vmem:[%s846_s3 + $0x70] sm:$0xff]  ;;  %v137_v49 = vld [vmem:[%s846_s3 + $0x78] sm:$0xff]  ;;  %v216_v51 = vld [vmem:[%s848_s5] sm:$0xff]  ;;  %v309_v21 = vlaneseq }
  0x11   :  { %509 = vmatprep.subr.bf16.mxu0 %v601_v3  ;;  %v543_v50 = vpack.c.bf16 %v137_v49, %v136_v48  ;;  %v217_v52 = vld [vmem:[%s848_s5 + $0x8] sm:$0xff]  ;;  %v218_v53 = vld [vmem:[%s848_s5 + $0x10] sm:$0xff]  ;;  %v219_v55 = vld [vmem:[%s848_s5 + $0x18] sm:$0xff] }
  0x12   :  { %532 = vmatpush3.bf16.msra.mxu1 %v531_v30  ;;  %v546_v54 = vpack.c.bf16 %v217_v52, %v216_v51  ;;  %v549_v56 = vpack.c.bf16 %v219_v55, %v218_v53  ;;  %v220_v57 = vld [vmem:[%s848_s5 + $0x20] sm:$0xff]  ;;  %v221_v58 = vld [vmem:[%s848_s5 + $0x28] sm:$0xff]  ;;  %v222_v60 = vld [vmem:[%s848_s5 + $0x30] sm:$0xff]  ;;  %v310_v22 = vand.u32 127, %v309_v21 }
  0x13   :  { %533 = vmatprep.subr.bf16.mxu1 %v601_v3  ;;  %v552_v59 = vpack.c.bf16 %v221_v58, %v220_v57  ;;  %v223_v61 = vld [vmem:[%s848_s5 + $0x38] sm:$0xff]  ;;  %v224_v63 = vld [vmem:[%s848_s5 + $0x40] sm:$0xff]  ;;  %v225_v0 = vld [vmem:[%s848_s5 + $0x48] sm:$0xff] }
  0x14   :  { %511 = vmatpush3.bf16.msra.mxu0 %v510_v27  ;;  %v555_v62 = vpack.c.bf16 %v223_v61, %v222_v60  ;;  %v558_v1 = vpack.c.bf16 %v225_v0, %v224_v63  ;;  %v226_v2 = vld [vmem:[%s848_s5 + $0x50] sm:$0xff]  ;;  %v227_v4 = vld [vmem:[%s848_s5 + $0x58] sm:$0xff]  ;;  %v229_v7 = vld [vmem:[%s848_s5 + $0x68] sm:$0xff]  ;;  %vm311_vm1 = vcmp.lt.s32.totalorder %v310_v22, 16 }
  0x15   :  { %512 = vmatprep.subr.bf16.mxu0 %v601_v3  ;;  %v561_v5 = vpack.c.bf16 %v227_v4, %v226_v2  ;;  %v338_v9 = vld [vmem:[%s845_s2] ss:$0 sm:$0xff]  ;;  %v230_v14 = vld [vmem:[%s848_s5 + $0x70] sm:$0xff]  ;;  %v231_v15 = vld [vmem:[%s848_s5 + $0x78] sm:$0xff] }
  0x16   :  { %535 = vmatpush3.bf16.msra.mxu1 %v534_v36  ;;  %v567_v16 = vpack.c.bf16 %v231_v15, %v230_v14  ;;  %v340_v23 = vld [vmem:[%s849_s6] ss:$0 sm:$0xff] }
  0x17   :  { %536 = vmatprep.subr.bf16.mxu1 %v601_v3 }
  0x18   :  { %514 = vmatpush3.bf16.msra.mxu0 %v513_v33 }
  0x19   :  { %515 = vmatprep.subr.bf16.mxu0 %v601_v3 }
  0x1a   :  { %538 = vmatpush3.bf16.msra.mxu1 %v537_v42 }
  0x1b   :  { %539 = vmatprep.subr.bf16.mxu1 %v601_v3 }
  0x1c   :  { %517 = vmatpush3.bf16.msra.mxu0 %v516_v39 }
  0x1d   :  { %518 = vmatprep.subr.bf16.mxu0 %v601_v3 }
  0x1e   :  { %541 = vmatpush3.bf16.msra.mxu1 %v540_v46 }
  0x1f   :  { %542 = vmatprep.subr.bf16.mxu1 %v601_v3 }
  0x20   :  { %520 = vmatpush3.bf16.msra.mxu0 %v519_v45 }
  0x21   :  { %545 = vmatprep.subr.bf16.mxu0 %v601_v3 }
  0x22   :  { %544 = vmatpush3.bf16.msra.mxu1 %v543_v50 }
  0x23   :  { %425 = vmatmul.mubr.f32.vlgmr.msra.gmra.mrb[0].mxu0 %v27_v47 }
  0x24   :  { %494 = vmatprep.mubr.msk.f32.mxu0 %vm602_vm0, %v603_v6  ;;  %547 = vmatpush3.bf16.msra.mxu0 %v546_v54  ;;  %v228_v6 = vld [vmem:[%s848_s5 + $0x60] sm:$0xff] }
  0x25   :  { %548 = vmatprep.subr.bf16.mxu0 %v601_v3  ;;  %v564_v8 = vpack.c.bf16 %v229_v7, %v228_v6 }
  0x28   :  { %550 = vmatpush3.bf16.msra.mxu0 %v549_v56 }
  0x29   :  { %551 = vmatprep.subr.bf16.mxu0 %v601_v3 }
  0x2c   :  { %553 = vmatpush3.bf16.msra.mxu0 %v552_v59 }
  0x2d   :  { %554 = vmatprep.subr.bf16.mxu0 %v601_v3 }
  0x30   :  { %556 = vmatpush3.bf16.msra.mxu0 %v555_v62 }
  0x31   :  { %557 = vmatprep.subr.bf16.mxu0 %v601_v3 }
  0x34   :  { %559 = vmatpush3.bf16.msra.mxu0 %v558_v1 }
  0x35   :  { %560 = vmatprep.subr.bf16.mxu0 %v601_v3 }
  0x38   :  { %562 = vmatpush3.bf16.msra.mxu0 %v561_v5 }
  0x39   :  { %563 = vmatprep.subr.bf16.mxu0 %v601_v3 }
  0x3c   :  { %565 = vmatpush3.bf16.msra.mxu0 %v564_v8 }
  0x3d   :  { %566 = vmatprep.subr.bf16.mxu0 %v601_v3  ;;  %v339_v3 = vld [vmem:[%s847_s4] ss:$0 sm:$0xff]  ;;  %s604_s4 = smov [#allocation2]  }
  0x3e   :  { %s330_s5 = sshll.u32 %s604_s4, 4  ;;  %s331_s5 = int_to_ptr.vmem [resolvable:$true] %s330_s5 }
  0x3f   :  { %s577_s6 = scalar_lea.vmem %s331_s5, 128  ;;  %p582_p1 = scmp.lt.s32.totalorder %s331_s5, %s331_s5 }
  0x40   :  { %568 = vmatpush3.bf16.msra.mxu0 %v567_v16  ;;  %p578_p0 = scmp.ne.s32.totalorder %s331_s5, %s577_s6  ;;  %p583_p2 = scmp.lt.s32.totalorder %s577_s6, %s577_s6 }
  0x42   :  { %p584_p3 = por %p583_p2, %p582_p1 }
  0x44   :  { %p585_p4 = pnand %p584_p3, %p578_p0 }
  0xf6   :  { %v117_v10 = vpop.f32.mrb[0].mxu0 }
  0xf7   :  { %v118_v11 = vadd.f32 %v338_v9, %v117_v10  ;;  %v426_v12 = vpop.f32.mrb[1].mxu0 }
  0xf9   :  { %v121_v13 = vmax.f32 %v118_v11, 0.0 }
  0xfb   :  { %460 = vmatmul.mubr.f32.vlgmr.msra.gmra.mrb[0].mxu1 %v121_v13 }
 0x1ce   :  { %v211_v17 = vpop.f32.mrb[0].mxu1 }
 0x1cf   :  { %v212_v18 = vadd.f32 %v339_v3, %v211_v17  ;;  %v461_v19 = vpop.f32.mrb[1].mxu1 }
 0x1d1   :  { %v215_v20 = vmax.f32 %v212_v18, 0.0 }
 0x1d3   :  { %495 = vmatmul.mubr.f32.vlgmr.msra.gmra.mrb[2].mxu0 %v215_v20 }
 0x2a6   :  { %v305_v24 = vpop.f32.mrb[2].mxu0 }
 0x2a7   :  { %v306_v25 = vadd.f32 %v340_v23, %v305_v24  ;;  %v496_v26 = vpop.f32.mrb[3].mxu0 }
 0x2a9   :  { %v312_v27 = vsel %vm311_vm1, %v306_v25, -inf }
 0x2aa   :  { %313 = vmax.xlane.f32.xlu0 %v312_v27 }
 0x337   :  { %v314_v28 = vpop.xlane.xlu0 %313 }
 0x338   :  { %v315_v29 = vsub.f32 %v312_v27, %v314_v28 }
 0x33a   :  { %v316_v30 = vmul.f32 1.442695, %v315_v29 }
 0x33c   :  { %573 = vpow2.f32 %v316_v30 }
 0x346   :  { %v574_v31 = vpop.eup %573 }
 0x347   :  { %318 = vadd.xlane.f32.xlu0 %v574_v31 }
 0x3d4   :  { %v319_v32 = vpop.xlane.xlu0 %318 }
 0x3d5   :  { %575 = vlog2.f32 %v319_v32 }
 0x3df   :  { %v576_v33 = vpop.eup %575 }
 0x3e0   :  { %v321_v34 = vmul.f32 0.6931472, %v576_v33 }
 0x3e2   :  { %v322_v35 = vsub.f32 %v315_v29, %v321_v34 }
 0x3e4   :  { %323 = vst [vmem:[#allocation2] sm:$0xff] %v322_v35 }
 0x3e5   :  { %588 = shalt.err (!%p585_p4)
}
 0x3e6   :  { %s589_s8 = scalar_lea.hbm %s850_s7, 128 }
 0x3e7   :  { %p590_p5 = scmp.ne.s32.totalorder %s850_s7, %s589_s8  ;;  %p593_p6 = scmp.lt.u32.totalorder %s589_s8, %s850_s7 }
 0x3e9   :  { %p595_p7 = pnand %p593_p6, %p590_p5 }
 0x3eb   :  { %598 = shalt.err (!%p595_p7)
}
 0x3ec   :  { %333 = dma.vmem_to_hbm [thread:$0]  %s331_s5, 128, %s850_s7, [#allocation3]  }
 0x3ed   :  { %599 = dma.done.wait [#allocation3], 128  }
 0x3ee   :  { %600 = vsyncadd [#allocation3], 4294967168 }
 0x3ef   :  { %337 = vsyncpa [#allocation3], 1 }

</bundles_post_ra>
